<compile_context>
chip_gen: v5e
topology: v5e:2x2
jax: 0.10.0
libtpu: 0.0.40
codegen_flags: <defaults>
</compile_context>

<pallas_src>
import functools
import math

import numpy as np
import jax
import jax.numpy as jnp
from jax import lax
from jax.experimental import pallas as pl
from jax.experimental.pallas import tpu as pltpu

# ---- static model hyper-params (small, consistent with the module) ----
H = 4            # number of heads
D_MODEL = 32     # d_model
D_K = D_MODEL // H
B = 2            # batch
S = 8            # sequence length
LANES = 128      # TPU lane width


def mha_kernel(x_ref, mask_ref, w_qkv_ref, b_qkv_ref, wo_t_ref, bo_ref, o_ref,
               *, num_heads, seq_len):
    """Fused MHA forward for the WHOLE (batch, seq) problem in one invocation.

    x_ref     : (3*B*S, d)        rows = [query rows | key rows | value rows]
    mask_ref  : (B*S, S)          original 0/1 mask, one row per (batch, query) pair
    w_qkv_ref : (d, 3*d)          pre-transposed, packed [Wq.T | Wk.T | Wv.T]
    b_qkv_ref : (1, 3*d)          packed [bq | bk | bv]
    wo_t_ref  : (d, d)            pre-transposed Wo.T
    bo_ref    : (1, d)
    o_ref     : (B*S*d/128, 128)  lane-dense row-major view of the (B*S, d) output
    """
    bs3, d = x_ref.shape
    bs = bs3 // 3
    d_k = d // num_heads
    nb = bs // seq_len
    scale = 1.0 / math.sqrt(d_k)

    # ---- single packed QKV projection: (3*bs, d) @ (d, 3*d) on the MXU ----
    y = (jnp.dot(x_ref[...], w_qkv_ref[...], preferred_element_type=jnp.float32)
         + b_qkv_ref[...])                                          # (3*bs, 3*d) f32

    # ---- block-diagonal structure of the batch-folded (bs, bs) score grid ----
    # Built in-kernel from iota compares; no (bs, bs) f32 mask/bias arrays are
    # materialized in the wrapper or DMA'd from HBM.  seq_len is a power of two,
    # so the block id is a bitwise AND (no integer vector division).
    blk = ~(seq_len - 1)
    ri = lax.broadcasted_iota(jnp.int32, (bs, bs), 0)
    ci = lax.broadcasted_iota(jnp.int32, (bs, bs), 1)
    same_batch = (ri & blk) == (ci & blk)
    xbatch_bias = jnp.where(same_batch, 0.0, -1e30).astype(jnp.float32)   # (bs, bs)
    # masked_fill(mask == 0, 1e-9) predicate, tiled across the nb key blocks
    # (cross-batch columns are killed by xbatch_bias regardless).
    is_masked = jnp.concatenate([mask_ref[...]] * nb, axis=1) == 0.0      # (bs, bs)

    # ---- K transposed ONCE, outside the head loop ----
    # Per-head slices k_t[lo:hi, :] are (d_k, bs) sublane-aligned views.
    k_t = y[1 * bs:2 * bs, d:2 * d].T                                     # (d, bs)

    ctx_heads = []
    for h in range(num_heads):                                   # static unroll (H=4)
        lo, hi = h * d_k, (h + 1) * d_k
        q_h = y[0 * bs:1 * bs, lo:hi]                            # (bs, d_k)
        v_h = y[2 * bs:3 * bs, 2 * d + lo:2 * d + hi]            # (bs, d_k)

        # scores = Q @ K^T / sqrt(d_k); plain (m,k)x(k,n) matmul, no per-head transpose.
        scores = jnp.dot(q_h, k_t[lo:hi, :],
                         preferred_element_type=jnp.float32) * scale     # (bs, bs)
        # Reproduce the module's masked_fill(mask == 0, 1e-9) quirk exactly; the
        # -1e30 additive bias zeroes the cross-batch entries that only exist
        # because batch is folded into rows.
        scores = jnp.where(is_masked, jnp.float32(1e-9), scores) + xbatch_bias

        m = jnp.max(scores, axis=-1, keepdims=True)
        e = jnp.exp(scores - m)
        # EUP reciprocal (separate VLIW slot) instead of a VPU divide.
        p_attn = e * pl.reciprocal(jnp.sum(e, axis=-1, keepdims=True), approx=True)
        # TODO(synk): training-mode dropout on p_attn not implemented (eval mode).

        ctx_heads.append(jnp.dot(p_attn, v_h,
                                 preferred_element_type=jnp.float32))    # (bs, d_k)

    # ---- ONE fused output projection over all heads, bias added once ----
    ctx_all = jnp.concatenate(ctx_heads, axis=1)                          # (bs, d)
    out = (jnp.dot(ctx_all, wo_t_ref[...], preferred_element_type=jnp.float32)
           + bo_ref[...])                                                 # (bs, d)

    # ---- lane-dense store ----
    # o_ref is the contiguous row-major (bs*d/128, 128) view of the (bs, d) output,
    # so this write is a full-width vst (not a 32-of-128-lane masked store).  The
    # repack is exactly out.reshape(-1, 128), expressed with static slices + concats.
    group = LANES // d                      # rows of `out` packed per output row
    packed = jnp.concatenate(
        [jnp.concatenate([out[group * r + j:group * r + j + 1, :]
                          for j in range(group)], axis=1)
         for r in range(o_ref.shape[0])],
        axis=0)                                                           # (bs*d/128, 128)
    o_ref[...] = packed.astype(o_ref.dtype)


def multi_headed_attention(q, k, v, mask, params):
    """q, k, v: (B, S, D_MODEL) float32; mask: (B, S, S) float32 (0 => masked)."""
    wq, bq, wk, bk, wv, bv, wo, bo = params
    batch, seq, d = q.shape
    bs = batch * seq
    assert (bs * d) % LANES == 0 and LANES % d == 0, "toy-shape packing assumption"
    assert seq & (seq - 1) == 0, "in-kernel block id uses a power-of-two seq_len"

    # ---- wrapper-side packing / layout plumbing (plain XLA, outside the kernel) ----
    x = jnp.concatenate(
        [q.reshape(bs, d), k.reshape(bs, d), v.reshape(bs, d)], axis=0)   # (3*bs, d)
    w_qkv = jnp.concatenate([wq.T, wk.T, wv.T], axis=1)                   # (d, 3*d)
    b_qkv = jnp.concatenate([bq, bk, bv], axis=1)                         # (1, 3*d)
    wo_t = wo.T                                                           # (d, d)
    mask2d = mask.reshape(bs, seq).astype(jnp.float32)                    # (bs, S) only

    vmem = pl.BlockSpec(memory_space=pltpu.MemorySpace.VMEM)
    out_flat = pl.pallas_call(
        functools.partial(mha_kernel, num_heads=H, seq_len=seq),
        out_shape=jax.ShapeDtypeStruct(((bs * d) // LANES, LANES), q.dtype),
        in_specs=[vmem] * 6,
        out_specs=vmem,
    )(x, mask2d, w_qkv, b_qkv, wo_t, bo)

    # (bs*d/128, 128) is the contiguous row-major view of (batch, seq, d): free reshape.
    return out_flat.reshape(batch, seq, d)


def reference_mha(q, k, v, mask, params):
    """Plain-JAX replica of the PyTorch forward (eval-mode dropout)."""
    wq, bq, wk, bk, wv, bv, wo, bo = params

    def lin(x, w, b):
        return x @ w.T + b[0]

    nb = q.shape[0]
    Q = lin(q, wq, bq).reshape(nb, -1, H, D_K).transpose(0, 2, 1, 3)
    K = lin(k, wk, bk).reshape(nb, -1, H, D_K).transpose(0, 2, 1, 3)
    V = lin(v, wv, bv).reshape(nb, -1, H, D_K).transpose(0, 2, 1, 3)

    scores = jnp.einsum('bhqd,bhkd->bhqk', Q, K) / math.sqrt(D_K)
    m = mask[:, None, :, :]                     # unsqueeze(1)
    scores = jnp.where(m == 0, 1e-9, scores)
    p = jax.nn.softmax(scores, axis=-1)
    x = jnp.einsum('bhqk,bhkd->bhqd', p, V)
    x = x.transpose(0, 2, 1, 3).reshape(nb, -1, H * D_K)
    return x @ wo.T + bo[0]


if __name__ == "__main__":
    key = jax.random.PRNGKey(0)
    ks = jax.random.split(key, 12)

    def init_linear(kw, kb):
        bound = 1.0 / math.sqrt(D_MODEL)
        w = jax.random.uniform(kw, (D_MODEL, D_MODEL), jnp.float32, -bound, bound)
        b = jax.random.uniform(kb, (1, D_MODEL), jnp.float32, -bound, bound)
        return w, b

    wq, bq = init_linear(ks[0], ks[1])
    wk, bk = init_linear(ks[2], ks[3])
    wv, bv = init_linear(ks[4], ks[5])
    wo, bo = init_linear(ks[6], ks[7])
    params = (wq, bq, wk, bk, wv, bv, wo, bo)

    q = jax.random.normal(ks[8], (B, S, D_MODEL), jnp.float32)
    k = jax.random.normal(ks[9], (B, S, D_MODEL), jnp.float32)
    v = jax.random.normal(ks[10], (B, S, D_MODEL), jnp.float32)
    # causal-style 0/1 mask (0 => masked position)
    mask = jnp.tril(jnp.ones((S, S), jnp.float32))[None].repeat(B, axis=0)

    out = multi_headed_attention(q, k, v, mask, params)
    out = jax.block_until_ready(out)

    ref = reference_mha(q, k, v, mask, params)
    # Tolerance loosened slightly vs. 2e-5 because the softmax normalization now uses
    # the EUP approximate reciprocal (pl.reciprocal(..., approx=True)).
    np.testing.assert_allclose(np.asarray(out), np.asarray(ref), rtol=2e-3, atol=2e-3)

    print("KERNEL_OK")
</pallas_src>

<mosaic_0001>
module attributes {stable_mosaic.version = 11 : i64} {
  func.func @mha_kernel(%arg0: memref<48x32xf32, #tpu.memory_space<vmem>>, %arg1: memref<16x8xf32, #tpu.memory_space<vmem>>, %arg2: memref<32x96xf32, #tpu.memory_space<vmem>>, %arg3: memref<1x96xf32, #tpu.memory_space<vmem>>, %arg4: memref<32x32xf32, #tpu.memory_space<vmem>>, %arg5: memref<1x32xf32, #tpu.memory_space<vmem>>, %arg6: memref<4x128xf32, #tpu.memory_space<vmem>>) attributes {dimension_semantics = [], scalar_prefetch = 0 : i64, scratch_operands = 0 : i64, tpu.core_type = #tpu.core_type<tc>} {
    %c0 = arith.constant 0 : index
    %c0_0 = arith.constant 0 : index
    %0 = vector.load %arg0[%c0, %c0_0] : memref<48x32xf32, #tpu.memory_space<vmem>>, vector<48x32xf32>
    %c0_1 = arith.constant 0 : index
    %c0_2 = arith.constant 0 : index
    %1 = vector.load %arg2[%c0_1, %c0_2] : memref<32x96xf32, #tpu.memory_space<vmem>>, vector<32x96xf32>
    %cst = arith.constant dense<0.000000e+00> : vector<48x96xf32>
    %2 = tpu.matmul %0, %1, %cst {dimension_numbers = #tpu.dot_dimension_numbers<[1], [0], [0], [1], [0, 0, 1, 1], [], []>} : vector<48x32xf32>, vector<32x96xf32>, vector<48x96xf32> -> vector<48x96xf32>
    %c0_3 = arith.constant 0 : index
    %c0_4 = arith.constant 0 : index
    %3 = vector.load %arg3[%c0_3, %c0_4] : memref<1x96xf32, #tpu.memory_space<vmem>>, vector<1x96xf32>
    %4 = vector.broadcast %3 : vector<1x96xf32> to vector<48x96xf32>
    %5 = arith.addf %2, %4 : vector<48x96xf32>
    %6 = tpu.iota {dimensions = array<i32: 0>} : vector<16x16xi32>
    %7 = tpu.iota {dimensions = array<i32: 1>} : vector<16x16xi32>
    %c-8_i32 = arith.constant -8 : i32
    %8 = vector.broadcast %c-8_i32 : i32 to vector<16x16xi32>
    %9 = arith.andi %6, %8 : vector<16x16xi32>
    %c-8_i32_5 = arith.constant -8 : i32
    %10 = vector.broadcast %c-8_i32_5 : i32 to vector<16x16xi32>
    %11 = arith.andi %7, %10 : vector<16x16xi32>
    %12 = arith.cmpi eq, %9, %11 : vector<16x16xi32>
    %cst_6 = arith.constant 0.000000e+00 : f32
    %cst_7 = arith.constant -1.000000e+30 : f32
    %13 = vector.broadcast %cst_6 : f32 to vector<16x16xf32>
    %14 = vector.broadcast %cst_7 : f32 to vector<16x16xf32>
    %15 = arith.select %12, %13, %14 : vector<16x16xi1>, vector<16x16xf32>
    %c0_8 = arith.constant 0 : index
    %c0_9 = arith.constant 0 : index
    %16 = vector.load %arg1[%c0_8, %c0_9] : memref<16x8xf32, #tpu.memory_space<vmem>>, vector<16x8xf32>
    %17 = tpu.concatenate %16, %16 in 1 : vector<16x8xf32>, vector<16x8xf32> -> vector<16x16xf32>
    %cst_10 = arith.constant 0.000000e+00 : f32
    %18 = vector.broadcast %cst_10 : f32 to vector<16x16xf32>
    %19 = arith.cmpf oeq, %17, %18 : vector<16x16xf32>
    %20 = vector.extract_strided_slice %5 {offsets = [16, 32], sizes = [16, 32], strides = [1, 1]} : vector<48x96xf32> to vector<16x32xf32>
    %21 = tpu.transpose %20, [1, 0] : vector<16x32xf32> -> vector<32x16xf32>
    %22 = vector.extract_strided_slice %5 {offsets = [0, 0], sizes = [16, 8], strides = [1, 1]} : vector<48x96xf32> to vector<16x8xf32>
    %23 = vector.extract_strided_slice %5 {offsets = [32, 64], sizes = [16, 8], strides = [1, 1]} : vector<48x96xf32> to vector<16x8xf32>
    %24 = vector.extract_strided_slice %21 {offsets = [0, 0], sizes = [8, 16], strides = [1, 1]} : vector<32x16xf32> to vector<8x16xf32>
    %cst_11 = arith.constant dense<0.000000e+00> : vector<16x16xf32>
    %25 = tpu.matmul %22, %24, %cst_11 {dimension_numbers = #tpu.dot_dimension_numbers<[1], [0], [0], [1], [0, 0, 1, 1], [], []>} : vector<16x8xf32>, vector<8x16xf32>, vector<16x16xf32> -> vector<16x16xf32>
    %cst_12 = arith.constant 0.353553385 : f32
    %26 = vector.broadcast %cst_12 : f32 to vector<16x16xf32>
    %27 = arith.mulf %25, %26 : vector<16x16xf32>
    %cst_13 = arith.constant 9.99999971E-10 : f32
    %28 = vector.broadcast %cst_13 : f32 to vector<16x16xf32>
    %29 = arith.select %19, %28, %27 : vector<16x16xi1>, vector<16x16xf32>
    %30 = arith.addf %29, %15 : vector<16x16xf32>
    %cst_14 = arith.constant dense<0xFF800000> : vector<16xf32>
    %31 = vector.multi_reduction <maximumf>, %30, %cst_14 [1] : vector<16x16xf32> to vector<16xf32>
    %32 = vector.shape_cast %31 : vector<16xf32> to vector<16x1xf32>
    %33 = vector.broadcast %32 : vector<16x1xf32> to vector<16x16xf32>
    %34 = arith.subf %30, %33 : vector<16x16xf32>
    %35 = math.exp %34 : vector<16x16xf32>
    %cst_15 = arith.constant dense<0.000000e+00> : vector<16xf32>
    %36 = vector.multi_reduction <add>, %35, %cst_15 [1] : vector<16x16xf32> to vector<16xf32>
    %37 = vector.shape_cast %36 : vector<16xf32> to vector<16x1xf32>
    %38 = tpu.reciprocal %37 {approx = true} : vector<16x1xf32> -> vector<16x1xf32>
    %39 = vector.broadcast %38 : vector<16x1xf32> to vector<16x16xf32>
    %40 = arith.mulf %35, %39 : vector<16x16xf32>
    %cst_16 = arith.constant dense<0.000000e+00> : vector<16x8xf32>
    %41 = tpu.matmul %40, %23, %cst_16 {dimension_numbers = #tpu.dot_dimension_numbers<[1], [0], [0], [1], [0, 0, 1, 1], [], []>} : vector<16x16xf32>, vector<16x8xf32>, vector<16x8xf32> -> vector<16x8xf32>
    %42 = vector.extract_strided_slice %5 {offsets = [0, 8], sizes = [16, 8], strides = [1, 1]} : vector<48x96xf32> to vector<16x8xf32>
    %43 = vector.extract_strided_slice %5 {offsets = [32, 72], sizes = [16, 8], strides = [1, 1]} : vector<48x96xf32> to vector<16x8xf32>
    %44 = vector.extract_strided_slice %21 {offsets = [8, 0], sizes = [8, 16], strides = [1, 1]} : vector<32x16xf32> to vector<8x16xf32>
    %cst_17 = arith.constant dense<0.000000e+00> : vector<16x16xf32>
    %45 = tpu.matmul %42, %44, %cst_17 {dimension_numbers = #tpu.dot_dimension_numbers<[1], [0], [0], [1], [0, 0, 1, 1], [], []>} : vector<16x8xf32>, vector<8x16xf32>, vector<16x16xf32> -> vector<16x16xf32>
    %cst_18 = arith.constant 0.353553385 : f32
    %46 = vector.broadcast %cst_18 : f32 to vector<16x16xf32>
    %47 = arith.mulf %45, %46 : vector<16x16xf32>
    %cst_19 = arith.constant 9.99999971E-10 : f32
    %48 = vector.broadcast %cst_19 : f32 to vector<16x16xf32>
    %49 = arith.select %19, %48, %47 : vector<16x16xi1>, vector<16x16xf32>
    %50 = arith.addf %49, %15 : vector<16x16xf32>
    %cst_20 = arith.constant dense<0xFF800000> : vector<16xf32>
    %51 = vector.multi_reduction <maximumf>, %50, %cst_20 [1] : vector<16x16xf32> to vector<16xf32>
    %52 = vector.shape_cast %51 : vector<16xf32> to vector<16x1xf32>
    %53 = vector.broadcast %52 : vector<16x1xf32> to vector<16x16xf32>
    %54 = arith.subf %50, %53 : vector<16x16xf32>
    %55 = math.exp %54 : vector<16x16xf32>
    %cst_21 = arith.constant dense<0.000000e+00> : vector<16xf32>
    %56 = vector.multi_reduction <add>, %55, %cst_21 [1] : vector<16x16xf32> to vector<16xf32>
    %57 = vector.shape_cast %56 : vector<16xf32> to vector<16x1xf32>
    %58 = tpu.reciprocal %57 {approx = true} : vector<16x1xf32> -> vector<16x1xf32>
    %59 = vector.broadcast %58 : vector<16x1xf32> to vector<16x16xf32>
    %60 = arith.mulf %55, %59 : vector<16x16xf32>
    %cst_22 = arith.constant dense<0.000000e+00> : vector<16x8xf32>
    %61 = tpu.matmul %60, %43, %cst_22 {dimension_numbers = #tpu.dot_dimension_numbers<[1], [0], [0], [1], [0, 0, 1, 1], [], []>} : vector<16x16xf32>, vector<16x8xf32>, vector<16x8xf32> -> vector<16x8xf32>
    %62 = vector.extract_strided_slice %5 {offsets = [0, 16], sizes = [16, 8], strides = [1, 1]} : vector<48x96xf32> to vector<16x8xf32>
    %63 = vector.extract_strided_slice %5 {offsets = [32, 80], sizes = [16, 8], strides = [1, 1]} : vector<48x96xf32> to vector<16x8xf32>
    %64 = vector.extract_strided_slice %21 {offsets = [16, 0], sizes = [8, 16], strides = [1, 1]} : vector<32x16xf32> to vector<8x16xf32>
    %cst_23 = arith.constant dense<0.000000e+00> : vector<16x16xf32>
    %65 = tpu.matmul %62, %64, %cst_23 {dimension_numbers = #tpu.dot_dimension_numbers<[1], [0], [0], [1], [0, 0, 1, 1], [], []>} : vector<16x8xf32>, vector<8x16xf32>, vector<16x16xf32> -> vector<16x16xf32>
    %cst_24 = arith.constant 0.353553385 : f32
    %66 = vector.broadcast %cst_24 : f32 to vector<16x16xf32>
    %67 = arith.mulf %65, %66 : vector<16x16xf32>
    %cst_25 = arith.constant 9.99999971E-10 : f32
    %68 = vector.broadcast %cst_25 : f32 to vector<16x16xf32>
    %69 = arith.select %19, %68, %67 : vector<16x16xi1>, vector<16x16xf32>
    %70 = arith.addf %69, %15 : vector<16x16xf32>
    %cst_26 = arith.constant dense<0xFF800000> : vector<16xf32>
    %71 = vector.multi_reduction <maximumf>, %70, %cst_26 [1] : vector<16x16xf32> to vector<16xf32>
    %72 = vector.shape_cast %71 : vector<16xf32> to vector<16x1xf32>
    %73 = vector.broadcast %72 : vector<16x1xf32> to vector<16x16xf32>
    %74 = arith.subf %70, %73 : vector<16x16xf32>
    %75 = math.exp %74 : vector<16x16xf32>
    %cst_27 = arith.constant dense<0.000000e+00> : vector<16xf32>
    %76 = vector.multi_reduction <add>, %75, %cst_27 [1] : vector<16x16xf32> to vector<16xf32>
    %77 = vector.shape_cast %76 : vector<16xf32> to vector<16x1xf32>
    %78 = tpu.reciprocal %77 {approx = true} : vector<16x1xf32> -> vector<16x1xf32>
    %79 = vector.broadcast %78 : vector<16x1xf32> to vector<16x16xf32>
    %80 = arith.mulf %75, %79 : vector<16x16xf32>
    %cst_28 = arith.constant dense<0.000000e+00> : vector<16x8xf32>
    %81 = tpu.matmul %80, %63, %cst_28 {dimension_numbers = #tpu.dot_dimension_numbers<[1], [0], [0], [1], [0, 0, 1, 1], [], []>} : vector<16x16xf32>, vector<16x8xf32>, vector<16x8xf32> -> vector<16x8xf32>
    %82 = vector.extract_strided_slice %5 {offsets = [0, 24], sizes = [16, 8], strides = [1, 1]} : vector<48x96xf32> to vector<16x8xf32>
    %83 = vector.extract_strided_slice %5 {offsets = [32, 88], sizes = [16, 8], strides = [1, 1]} : vector<48x96xf32> to vector<16x8xf32>
    %84 = vector.extract_strided_slice %21 {offsets = [24, 0], sizes = [8, 16], strides = [1, 1]} : vector<32x16xf32> to vector<8x16xf32>
    %cst_29 = arith.constant dense<0.000000e+00> : vector<16x16xf32>
    %85 = tpu.matmul %82, %84, %cst_29 {dimension_numbers = #tpu.dot_dimension_numbers<[1], [0], [0], [1], [0, 0, 1, 1], [], []>} : vector<16x8xf32>, vector<8x16xf32>, vector<16x16xf32> -> vector<16x16xf32>
    %cst_30 = arith.constant 0.353553385 : f32
    %86 = vector.broadcast %cst_30 : f32 to vector<16x16xf32>
    %87 = arith.mulf %85, %86 : vector<16x16xf32>
    %cst_31 = arith.constant 9.99999971E-10 : f32
    %88 = vector.broadcast %cst_31 : f32 to vector<16x16xf32>
    %89 = arith.select %19, %88, %87 : vector<16x16xi1>, vector<16x16xf32>
    %90 = arith.addf %89, %15 : vector<16x16xf32>
    %cst_32 = arith.constant dense<0xFF800000> : vector<16xf32>
    %91 = vector.multi_reduction <maximumf>, %90, %cst_32 [1] : vector<16x16xf32> to vector<16xf32>
    %92 = vector.shape_cast %91 : vector<16xf32> to vector<16x1xf32>
    %93 = vector.broadcast %92 : vector<16x1xf32> to vector<16x16xf32>
    %94 = arith.subf %90, %93 : vector<16x16xf32>
    %95 = math.exp %94 : vector<16x16xf32>
    %cst_33 = arith.constant dense<0.000000e+00> : vector<16xf32>
    %96 = vector.multi_reduction <add>, %95, %cst_33 [1] : vector<16x16xf32> to vector<16xf32>
    %97 = vector.shape_cast %96 : vector<16xf32> to vector<16x1xf32>
    %98 = tpu.reciprocal %97 {approx = true} : vector<16x1xf32> -> vector<16x1xf32>
    %99 = vector.broadcast %98 : vector<16x1xf32> to vector<16x16xf32>
    %100 = arith.mulf %95, %99 : vector<16x16xf32>
    %cst_34 = arith.constant dense<0.000000e+00> : vector<16x8xf32>
    %101 = tpu.matmul %100, %83, %cst_34 {dimension_numbers = #tpu.dot_dimension_numbers<[1], [0], [0], [1], [0, 0, 1, 1], [], []>} : vector<16x16xf32>, vector<16x8xf32>, vector<16x8xf32> -> vector<16x8xf32>
    %102 = tpu.concatenate %41, %61, %81, %101 in 1 : vector<16x8xf32>, vector<16x8xf32>, vector<16x8xf32>, vector<16x8xf32> -> vector<16x32xf32>
    %c0_35 = arith.constant 0 : index
    %c0_36 = arith.constant 0 : index
    %103 = vector.load %arg4[%c0_35, %c0_36] : memref<32x32xf32, #tpu.memory_space<vmem>>, vector<32x32xf32>
    %cst_37 = arith.constant dense<0.000000e+00> : vector<16x32xf32>
    %104 = tpu.matmul %102, %103, %cst_37 {dimension_numbers = #tpu.dot_dimension_numbers<[1], [0], [0], [1], [0, 0, 1, 1], [], []>} : vector<16x32xf32>, vector<32x32xf32>, vector<16x32xf32> -> vector<16x32xf32>
    %c0_38 = arith.constant 0 : index
    %c0_39 = arith.constant 0 : index
    %105 = vector.load %arg5[%c0_38, %c0_39] : memref<1x32xf32, #tpu.memory_space<vmem>>, vector<1x32xf32>
    %106 = vector.broadcast %105 : vector<1x32xf32> to vector<16x32xf32>
    %107 = arith.addf %104, %106 : vector<16x32xf32>
    %108 = vector.extract_strided_slice %107 {offsets = [0, 0], sizes = [1, 32], strides = [1, 1]} : vector<16x32xf32> to vector<1x32xf32>
    %109 = vector.extract_strided_slice %107 {offsets = [1, 0], sizes = [1, 32], strides = [1, 1]} : vector<16x32xf32> to vector<1x32xf32>
    %110 = vector.extract_strided_slice %107 {offsets = [2, 0], sizes = [1, 32], strides = [1, 1]} : vector<16x32xf32> to vector<1x32xf32>
    %111 = vector.extract_strided_slice %107 {offsets = [3, 0], sizes = [1, 32], strides = [1, 1]} : vector<16x32xf32> to vector<1x32xf32>
    %112 = tpu.concatenate %108, %109, %110, %111 in 1 : vector<1x32xf32>, vector<1x32xf32>, vector<1x32xf32>, vector<1x32xf32> -> vector<1x128xf32>
    %113 = vector.extract_strided_slice %107 {offsets = [4, 0], sizes = [1, 32], strides = [1, 1]} : vector<16x32xf32> to vector<1x32xf32>
    %114 = vector.extract_strided_slice %107 {offsets = [5, 0], sizes = [1, 32], strides = [1, 1]} : vector<16x32xf32> to vector<1x32xf32>
    %115 = vector.extract_strided_slice %107 {offsets = [6, 0], sizes = [1, 32], strides = [1, 1]} : vector<16x32xf32> to vector<1x32xf32>
    %116 = vector.extract_strided_slice %107 {offsets = [7, 0], sizes = [1, 32], strides = [1, 1]} : vector<16x32xf32> to vector<1x32xf32>
    %117 = tpu.concatenate %113, %114, %115, %116 in 1 : vector<1x32xf32>, vector<1x32xf32>, vector<1x32xf32>, vector<1x32xf32> -> vector<1x128xf32>
    %118 = vector.extract_strided_slice %107 {offsets = [8, 0], sizes = [1, 32], strides = [1, 1]} : vector<16x32xf32> to vector<1x32xf32>
    %119 = vector.extract_strided_slice %107 {offsets = [9, 0], sizes = [1, 32], strides = [1, 1]} : vector<16x32xf32> to vector<1x32xf32>
    %120 = vector.extract_strided_slice %107 {offsets = [10, 0], sizes = [1, 32], strides = [1, 1]} : vector<16x32xf32> to vector<1x32xf32>
    %121 = vector.extract_strided_slice %107 {offsets = [11, 0], sizes = [1, 32], strides = [1, 1]} : vector<16x32xf32> to vector<1x32xf32>
    %122 = tpu.concatenate %118, %119, %120, %121 in 1 : vector<1x32xf32>, vector<1x32xf32>, vector<1x32xf32>, vector<1x32xf32> -> vector<1x128xf32>
    %123 = vector.extract_strided_slice %107 {offsets = [12, 0], sizes = [1, 32], strides = [1, 1]} : vector<16x32xf32> to vector<1x32xf32>
    %124 = vector.extract_strided_slice %107 {offsets = [13, 0], sizes = [1, 32], strides = [1, 1]} : vector<16x32xf32> to vector<1x32xf32>
    %125 = vector.extract_strided_slice %107 {offsets = [14, 0], sizes = [1, 32], strides = [1, 1]} : vector<16x32xf32> to vector<1x32xf32>
    %126 = vector.extract_strided_slice %107 {offsets = [15, 0], sizes = [1, 32], strides = [1, 1]} : vector<16x32xf32> to vector<1x32xf32>
    %127 = tpu.concatenate %123, %124, %125, %126 in 1 : vector<1x32xf32>, vector<1x32xf32>, vector<1x32xf32>, vector<1x32xf32> -> vector<1x128xf32>
    %128 = tpu.concatenate %112, %117, %122, %127 in 0 : vector<1x128xf32>, vector<1x128xf32>, vector<1x128xf32>, vector<1x128xf32> -> vector<4x128xf32>
    %c0_40 = arith.constant 0 : index
    %c0_41 = arith.constant 0 : index
    %129 = vector.load %arg6[%c0_40, %c0_41] : memref<4x128xf32, #tpu.memory_space<vmem>>, vector<4x128xf32>
    tpu.vector_store %arg6[%c0_40, %c0_41], %128 {strides = array<i32>} : memref<4x128xf32, #tpu.memory_space<vmem>>, vector<4x128xf32>,
    return
  }
}

</mosaic_0001>

<bundles_post_ra>
// kernel: tpu_custom_call.1
= control target key start
LH: loop header
LB: loop body
LE: loop exit
PB: predicated region body
PF: predicated region fallthrough
CT: control target
= control target key end

     0   :  { %s1046_s0 = inlined_call_operand.vmem [shape: f32[48,32], index: 0, kind: input, shape index: {}]   ;;  %s1047_s1 = inlined_call_operand.vmem [shape: f32[16,8], index: 1, kind: input, shape index: {}]   ;;  %s1048_s2 = inlined_call_operand.vmem [shape: f32[32,96], index: 2, kind: input, shape index: {}]   ;;  %s1049_s3 = inlined_call_operand.vmem [shape: f32[1,96], index: 3, kind: input, shape index: {}]   ;;  %s1050_s4 = inlined_call_operand.vmem [shape: f32[32,32], index: 4, kind: input, shape index: {}]   ;;  %s1051_s5 = inlined_call_operand.vmem [shape: f32[1,32], index: 5, kind: input, shape index: {}]   ;;  %s1052_s6 = inlined_call_operand.hbm [shape: f32[4,128], index: 6, kind: output, shape index: {}]  }
   0x1   :  { %v33_v0 = vld [vmem:[%s1048_s2 + $0x18] sm:$0xff]  ;;  %v32_v1 = vld [vmem:[%s1048_s2 + $0x10] sm:$0xff]  ;;  %v31_v2 = vld [vmem:[%s1048_s2 + $0x8] sm:$0xff] }
   0x2   :  { %69 = vmatpush.msra.mxu0 %v33_v0 }
   0x4   :  { %70 = vmatpush.msra.mxu0 %v32_v1 }
   0x5   :  { %11 = vsyncpa [#allocation3], 0  ;;  %v30_v3 = vld [vmem:[%s1048_s2] sm:$0xff]  ;;  %vm38_vm0 = vcmask 261120   ;;  %v25_v5 = vld [vmem:[%s1046_s0 + $0x8] sm:$0xff]  ;;  %s792_s14 = smov 120   ;;  %v92_v27 = vlaneseq }
   0x6   :  { %71 = vmatpush.msra.mxu0 %v31_v2  ;;  %v24_v4 = vld [vmem:[%s1046_s0] sm:$0xff]  ;;  %v26_v6 = vld [vmem:[%s1046_s0 + $0x10] sm:$0xff]  ;;  %v27_v7 = vld [vmem:[%s1046_s0 + $0x18] sm:$0xff]  ;;  %s794_s15 = smov 96   ;;  %s795_s22 = smov 8   ;;  %vm114_vm1 = vcmask 64512  }
   0x7   :  { %v875_v8 = vld [vmem:[%s1049_s3] ss:$0 sm:$0xff]  ;;  %s793_s3 = smov 88   ;;  %v105_v18 = vld [vmem:[%s1047_s1 + $0x8] sm:$0xff]  ;;  %v93_v28 = vshrl.u32 %v92_v27, 7  ;;  %v96_v29 = vand.u32 127, %v92_v27 }
   0x8   :  { %72 = vmatpush.msra.mxu0 %v30_v3  ;;  %v104_v17 = vld [vmem:[%s1047_s1] sm:$0xff]  ;;  %v29_v20 = vld [vmem:[%s1046_s0 + $0x28] sm:$0xff]  ;;  %v796_v37 = vmov -1e+30   ;;  %vm164_vm4 = vcmask 130048   ;;  %s798_s1 = smov 56  }
   0x9   :  { %663 = vmatmul.msk.f32.vlgmr.msra.gmra.mxu0 %vm38_vm0, %v24_v4  ;;  %v28_v19 = vld [vmem:[%s1046_s0 + $0x20] sm:$0xff]  ;;  %v97_v31 = vand.u32 4294967288, %v93_v28  ;;  %v99_v32 = vand.u32 4294967288, %v96_v29  ;;  %v94_v34 = vadd.s32 8, %v93_v28  ;;  %s797_s0 = smov 64   ;;  %s799_s25 = smov 80  }
   0xa   :  { %s800_s26 = smov 72   ;;  %s801_s27 = smov 112   ;;  %vm558_vm7 = vcmask 195584   ;;  %vm612_vm8 = vcmask 523264   ;;  %vm614_vm9 = vcmask 785408   ;;  %vm640_vm10 = vcmask 1040384  }
   0xb   :  { %vm100_vm2 = vcmp.eq.s32.totalorder %v97_v31, %v99_v32  ;;  %v98_v40 = vand.u32 4294967288, %v94_v34  ;;  %s802_s28 = smov 104   ;;  %s803_s29 = smov 48   ;;  %vm642_vm11 = vcmask 1041408   ;;  %vm644_vm12 = vcmask 1042432  }
   0xc   :  { %v927_v38 = vsel %vm100_vm2, 0.0, %v796_v37  ;;  %s804_s30 = smov 40   ;;  %s805_s7 = smov 16  }
   0xd   :  { %vm101_vm5 = vcmp.eq.s32.totalorder %v98_v40, %v99_v32  ;;  %s806_s13 = smov 24   ;;  %s807_s17 = smov 32  }
   0xe   :  { %v939_v50 = vsel %vm101_vm5, 0.0, %v796_v37  ;;  %s654_s20 = sshll.u32 %s1052_s6, 4  ;;  %s655_s20 = int_to_ptr.hbm [resolvable:$true] %s654_s20 }
  0x11   :  { %664 = vmatmul.msk.f32.gmra.mxu0 %vm38_vm0, %v25_v5 }
  0x19   :  { %665 = vmatmul.msk.f32.gmra.mxu0 %vm38_vm0, %v26_v6 }
  0x21   :  { %666 = vmatmul.msk.f32.gmra.mxu0 %vm38_vm0, %v27_v7 }
  0x29   :  { %667 = vmatmul.msk.f32.gmra.mxu0 %vm38_vm0, %v28_v19 }
  0x31   :  { %668 = vmatmul.msk.f32.gmra.mxu0 %vm38_vm0, %v29_v20 }
  0x86   :  { %v74_v9 = vpop.f32.mrf.mxu0 }
  0x87   :  { %v878_v10 = vadd.f32 %v875_v8, %v74_v9 }
  0x89   :  { %224 = vrot.lane.b32.xlu2 %v878_v10, %s792_s14 }
  0x8e   :  { %v77_v11 = vpop.f32.mrf.mxu0 }
  0x8f   :  { %v882_v12 = vadd.f32 %v875_v8, %v77_v11 }
  0x91   :  { %226 = vrot.lane.b32.xlu2 %v882_v12, %s792_s14 }
  0x96   :  { %v80_v13 = vpop.f32.mrf.mxu0 }
  0x97   :  { %v892_v16 = vadd.f32 %v875_v8, %v80_v13 }
  0x9e   :  { %v83_v14 = vpop.f32.mrf.mxu0 }
  0x9f   :  { %v886_v15 = vadd.f32 %v875_v8, %v83_v14 }
  0xa1   :  { %230 = vrot.lane.b32.xlu1 %v886_v15, %s793_s3  ;;  %123 = vrot.lane.b32.xlu0 %v886_v15, %s794_s15 }
  0xa6   :  { %v86_v57 = vpop.f32.mrf.mxu0 }
  0xa7   :  { %v87_v63 = vadd.f32 %v875_v8, %v86_v57 }
  0xa9   :  { %228 = vrot.lane.b32.xlu1 %v892_v16, %s793_s3  ;;  %121 = vrot.lane.b32.xlu0 %v892_v16, %s794_s15 }
  0xae   :  { %v89_v62 = vpop.f32.mrf.mxu0 }
  0xaf   :  { %v90_v0 = vadd.f32 %v875_v8, %v89_v62 }
  0xb1   :  { %108 = vrot.lane.b32.xlu0 %v104_v17, %s795_s22  ;;  %110 = vrot.lane.b32.xlu1 %v105_v18, %s795_s22  ;;  %v953_v1 = vpack.i.bf16 %v87_v63, %v90_v0 }
  0xe3   :  { %v225_v25 = vpop.permute.xlu2 %224 }
  0xeb   :  { %v227_v26 = vpop.permute.xlu2 %226 }
 0x113   :  { %v231_v21 = vpop.permute.xlu1 %230  ;;  %v124_v22 = vpop.permute.xlu0 %123 }
 0x114   :  { %669 = vmatpush.xpose.msk.msra.mxu1 %vm114_vm1, %v124_v22  ;;  %675 = vmatpush.xpose.msk.msra.mxu3 %vm114_vm1, %v231_v21 }
 0x11b   :  { %v229_v23 = vpop.permute.xlu1 %228  ;;  %v122_v24 = vpop.permute.xlu0 %121 }
 0x11c   :  { %670 = vmatpush.xpose.msk.msra.mxu1 %vm114_vm1, %v122_v24  ;;  %676 = vmatpush.xpose.msk.msra.mxu3 %vm114_vm1, %v229_v23 }
 0x11f   :  { %671 = vmatmul.msk.f32.vlgmr.msra.gmra.mxu1 %vm114_vm1, %v878_v10  ;;  %677 = vmatmul.msk.f32.vlgmr.msra.gmra.mxu3 %vm114_vm1, %v225_v25 }
 0x123   :  { %v109_v30 = vpop.permute.xlu0 %108  ;;  %v111_v39 = vpop.permute.xlu1 %110 }
 0x124   :  { %v924_v33 = vsel %vm114_vm1, %v104_v17, %v109_v30  ;;  %v933_v43 = vsel %vm114_vm1, %v105_v18, %v111_v39 }
 0x125   :  { %vm117_vm3 = vcmp.eq.f32.partialorder %v924_v33, 0.0  ;;  %vm118_vm6 = vcmp.eq.f32.partialorder %v933_v43, 0.0 }
 0x127   :  { %672 = vmatmul.msk.f32.gmra.mxu1 %vm114_vm1, %v882_v12  ;;  %678 = vmatmul.msk.f32.gmra.mxu3 %vm114_vm1, %v227_v26 }
 0x19c   :  { %v152_v35 = vpop.f32.mrf.mxu1 }
 0x19d   :  { %v158_v36 = vmul.f32 0.35355338, %v152_v35 }
 0x19f   :  { %v160_v41 = vsel %vm117_vm3, 1e-09, %v158_v36 }
 0x1a0   :  { %v162_v42 = vadd.f32 %v160_v41, %v927_v38 }
 0x1a2   :  { %v257_v44 = vpop.f32.mrf.mxu3  ;;  %v165_v45 = vsel %vm164_vm4, %v162_v42, -inf }
 0x1a3   :  { %v263_v46 = vmul.f32 0.35355338, %v257_v44  ;;  %166 = vmax.xlane.f32.xlu2 %v165_v45 }
 0x1a4   :  { %v155_v47 = vpop.f32.mrf.mxu1 }
 0x1a5   :  { %v265_v48 = vsel %vm117_vm3, 1e-09, %v263_v46  ;;  %v159_v49 = vmul.f32 0.35355338, %v155_v47 }
 0x1a6   :  { %v267_v51 = vadd.f32 %v265_v48, %v927_v38 }
 0x1a7   :  { %v161_v52 = vsel %vm118_vm6, 1e-09, %v159_v49 }
 0x1a8   :  { %v269_v53 = vsel %vm164_vm4, %v267_v51, -inf  ;;  %v163_v54 = vadd.f32 %v161_v52, %v939_v50 }
 0x1a9   :  { %270 = vmax.xlane.f32.xlu1 %v269_v53 }
 0x1aa   :  { %v260_v55 = vpop.f32.mrf.mxu3  ;;  %v168_v56 = vsel %vm164_vm4, %v163_v54, -inf }
 0x1ab   :  { %v264_v58 = vmul.f32 0.35355338, %v260_v55  ;;  %169 = vmax.xlane.f32.xlu0 %v168_v56 }
 0x1ad   :  { %v266_v59 = vsel %vm118_vm6, 1e-09, %v264_v58 }
 0x1ae   :  { %v268_v60 = vadd.f32 %v266_v59, %v939_v50 }
 0x1b0   :  { %v272_v61 = vsel %vm164_vm4, %v268_v60, -inf }
 0x1b1   :  { %273 = vmax.xlane.f32.xlu2 %v272_v61 }
 0x1bf   :  { %713 = vrot.lane.b32.xlu0 %v953_v1, %s797_s0 }
 0x1c2   :  { %718 = vrot.lane.b32.xlu1 %v953_v1, %s798_s1 }
 0x1c7   :  { %332 = vrot.lane.b32.xlu0 %v886_v15, %s799_s25 }
 0x1c9   :  { %434 = vrot.lane.b32.xlu2 %v886_v15, %s800_s26 }
 0x1ca   :  { %432 = vrot.lane.b32.xlu1 %v892_v16, %s800_s26 }
 0x1cf   :  { %330 = vrot.lane.b32.xlu0 %v892_v16, %s799_s25 }
 0x1d7   :  { %326 = vrot.lane.b32.xlu0 %v878_v10, %s801_s27 }
 0x1df   :  { %328 = vrot.lane.b32.xlu0 %v882_v12, %s801_s27 }
 0x216   :  { %v167_v2 = vpop.xlane.xlu2 %166 }
 0x217   :  { %v171_v3 = vsub.f32 %v162_v42, %v167_v2 }
 0x219   :  { %v173_v4 = vmul.f32 1.442695, %v171_v3 }
 0x21b   :  { %734 = vpow2.f32 %v173_v4 }
 0x21c   :  { %v271_v5 = vpop.xlane.xlu1 %270 }
 0x21d   :  { %v275_v6 = vsub.f32 %v267_v51, %v271_v5 }
 0x21e   :  { %v170_v7 = vpop.xlane.xlu0 %169 }
 0x21f   :  { %v277_v8 = vmul.f32 1.442695, %v275_v6  ;;  %v172_v9 = vsub.f32 %v163_v54, %v170_v7 }
 0x221   :  { %v735_v11 = vpop.eup %734  ;;  %736 = vpow2.f32 %v277_v8  ;;  %v175_v13 = vmul.f32 1.442695, %v172_v9 }
 0x222   :  { %v177_v14 = vsel %vm164_vm4, %v735_v11, 0.0 }
 0x223   :  { %738 = vpow2.f32 %v175_v13  ;;  %178 = vadd.xlane.f32.xlu2 %v177_v14 }
 0x224   :  { %v274_v15 = vpop.xlane.xlu2 %273 }
 0x225   :  { %v276_v16 = vsub.f32 %v268_v60, %v274_v15 }
 0x227   :  { %v737_v17 = vpop.eup %736  ;;  %v279_v18 = vmul.f32 1.442695, %v276_v16 }
 0x228   :  { %v281_v20 = vsel %vm164_vm4, %v737_v17, 0.0 }
 0x229   :  { %v739_v19 = vpop.eup %738  ;;  %740 = vpow2.f32 %v279_v18 }
 0x22a   :  { %v180_v21 = vsel %vm164_vm4, %v739_v19, 0.0 }
 0x22b   :  { %282 = vadd.xlane.f32.xlu2 %v281_v20  ;;  %181 = vadd.xlane.f32.xlu1 %v180_v21 }
 0x22c   :  { %v435_v35 = vpop.permute.xlu2 %434 }
 0x22f   :  { %v741_v22 = vpop.eup %740 }
 0x230   :  { %v284_v24 = vsel %vm164_vm4, %v741_v22, 0.0 }
 0x231   :  { %v714_v23 = vpop.permute.xlu0 %713 }
 0x232   :  { %v715_v25 = vunpack.i.l.bf16 %v714_v23  ;;  %v716_v26 = vunpack.i.h.bf16 %v714_v23 }
 0x233   :  { %285 = vadd.xlane.f32.xlu2 %v284_v24 }
 0x234   :  { %v719_v27 = vpop.permute.xlu1 %718  ;;  %215 = vmatpush.msra.mxu2 %v715_v25 }
 0x235   :  { %v720_v28 = vunpack.i.l.bf16 %v719_v27  ;;  %v721_v29 = vunpack.i.h.bf16 %v719_v27 }
 0x236   :  { %216 = vmatpush.msra.mxu2 %v716_v26 }
 0x238   :  { %317 = vmatpush.msrb.mxu2 %v720_v28 }
 0x239   :  { %v333_v30 = vpop.permute.xlu0 %332 }
 0x23a   :  { %318 = vmatpush.msrb.mxu2 %v721_v29  ;;  %681 = vmatpush.xpose.msk.msrb.mxu1 %vm114_vm1, %v333_v30 }
 0x23c   :  { %v433_v36 = vpop.permute.xlu1 %432 }
 0x241   :  { %v331_v31 = vpop.permute.xlu0 %330 }
 0x242   :  { %682 = vmatpush.xpose.msk.msrb.mxu1 %vm114_vm1, %v331_v31 }
 0x244   :  { %428 = vrot.lane.b32.xlu1 %v878_v10, %s802_s28 }
 0x249   :  { %v327_v32 = vpop.permute.xlu0 %326 }
 0x24a   :  { %683 = vmatmul.msk.f32.vlgmr.msrb.gmra.mxu1 %vm114_vm1, %v327_v32 }
 0x24b   :  { %430 = vrot.lane.b32.xlu2 %v882_v12, %s802_s28 }
 0x251   :  { %v329_v34 = vpop.permute.xlu0 %328 }
 0x252   :  { %684 = vmatmul.msk.f32.gmra.mxu1 %vm114_vm1, %v329_v34 }
 0x296   :  { %v179_v37 = vpop.xlane.xlu2 %178 }
 0x297   :  { %742 = vrcp.f32 %v179_v37 }
 0x29d   :  { %v743_v39 = vpop.eup %742 }
 0x29e   :  { %v182_v40 = vpop.xlane.xlu1 %181  ;;  %v185_v41 = vmul.f32 %v743_v39, %v735_v11  ;;  %v283_v42 = vpop.xlane.xlu2 %282 }
 0x29f   :  { %744 = vrcp.f32 %v182_v40 }
 0x2a0   :  { %673 = vmatmul.msk.f32.vlgmr.msra.gmra.mxu2 %vm164_vm4, %v185_v41  ;;  %746 = vrcp.f32 %v283_v42 }
 0x2a1   :  { %687 = vmatpush.xpose.msk.msra.mxu2 %vm114_vm1, %v435_v35 }
 0x2a5   :  { %688 = vmatpush.xpose.msk.msra.mxu2 %vm114_vm1, %v433_v36  ;;  %v745_v10 = vpop.eup %744 }
 0x2a6   :  { %v186_v12 = vmul.f32 %v745_v10, %v739_v19  ;;  %v286_v44 = vpop.xlane.xlu2 %285  ;;  %v747_v45 = vpop.eup %746 }
 0x2a7   :  { %748 = vrcp.f32 %v286_v44  ;;  %v289_v46 = vmul.f32 %v747_v45, %v737_v17 }
 0x2a8   :  { %674 = vmatmul.msk.f32.gmra.mxu2 %vm164_vm4, %v186_v12 }
 0x2ad   :  { %v749_v47 = vpop.eup %748 }
 0x2ae   :  { %v290_v48 = vmul.f32 %v749_v47, %v741_v22  ;;  %v431_v52 = vpop.permute.xlu2 %430 }
 0x2b0   :  { %679 = vmatmul.msk.f32.vlgmr.msrb.gmra.mxu2 %vm164_vm4, %v289_v46 }
 0x2b6   :  { %v429_v49 = vpop.permute.xlu1 %428 }
 0x2b8   :  { %680 = vmatmul.msk.f32.gmra.mxu2 %vm164_vm4, %v290_v48 }
 0x2c0   :  { %689 = vmatmul.msk.f32.vlgmr.msra.gmra.mxu2 %vm114_vm1, %v429_v49 }
 0x2c7   :  { %v359_v51 = vpop.f32.mrf.mxu1 }
 0x2c8   :  { %v365_v53 = vmul.f32 0.35355338, %v359_v51  ;;  %690 = vmatmul.msk.f32.gmra.mxu2 %vm114_vm1, %v431_v52  ;;  %v564_v51 = vld [vmem:[%s1050_s4 + $0x18] sm:$0xff]  ;;  %v563_v52 = vld [vmem:[%s1050_s4 + $0x10] sm:$0xff] }
 0x2ca   :  { %v367_v54 = vsel %vm117_vm3, 1e-09, %v365_v53  ;;  %v562_v53 = vld [vmem:[%s1050_s4 + $0x8] sm:$0xff] }
 0x2cb   :  { %v369_v55 = vadd.f32 %v367_v54, %v927_v38 }
 0x2cd   :  { %v371_v56 = vsel %vm164_vm4, %v369_v55, -inf }
 0x2ce   :  { %372 = vmax.xlane.f32.xlu1 %v371_v56 }
 0x2cf   :  { %v362_v57 = vpop.f32.mrf.mxu1 }
 0x2d0   :  { %v366_v58 = vmul.f32 0.35355338, %v362_v57  ;;  %v561_v57 = vld [vmem:[%s1050_s4] sm:$0xff] }
 0x2d2   :  { %v368_v59 = vsel %vm118_vm6, 1e-09, %v366_v58 }
 0x2d3   :  { %v370_v60 = vadd.f32 %v368_v59, %v939_v50 }
 0x2d5   :  { %v374_v61 = vsel %vm164_vm4, %v370_v60, -inf }
 0x2d6   :  { %375 = vmax.xlane.f32.xlu2 %v374_v61 }
 0x2ee   :  { %723 = vrot.lane.b32.xlu2 %v953_v1, %s803_s29 }
 0x323   :  { %v991_v62 = vpop.f32.mrf.mxu2 }
 0x32b   :  { %v993_v63 = vpop.f32.mrf.mxu2 }
 0x333   :  { %v320_v0 = vpop.f32.mrf.mxu2 }
 0x33b   :  { %v323_v2 = vpop.f32.mrf.mxu2 }
 0x341   :  { %v373_v3 = vpop.xlane.xlu1 %372 }
 0x342   :  { %v377_v4 = vsub.f32 %v369_v55, %v373_v3 }
 0x343   :  { %v461_v5 = vpop.f32.mrf.mxu2 }
 0x344   :  { %v379_v6 = vmul.f32 1.442695, %v377_v4  ;;  %v467_v7 = vmul.f32 0.35355338, %v461_v5 }
 0x346   :  { %v469_v8 = vsel %vm117_vm3, 1e-09, %v467_v7  ;;  %750 = vpow2.f32 %v379_v6 }
 0x347   :  { %v471_v9 = vadd.f32 %v469_v8, %v927_v38 }
 0x349   :  { %v376_v11 = vpop.xlane.xlu2 %375  ;;  %v473_v14 = vsel %vm164_vm4, %v471_v9, -inf }
 0x34a   :  { %v378_v13 = vsub.f32 %v370_v60, %v376_v11  ;;  %474 = vmax.xlane.f32.xlu0 %v473_v14 }
 0x34b   :  { %v464_v15 = vpop.f32.mrf.mxu2 }
 0x34c   :  { %v381_v16 = vmul.f32 1.442695, %v378_v13  ;;  %v468_v17 = vmul.f32 0.35355338, %v464_v15  ;;  %v751_v18 = vpop.eup %750 }
 0x34d   :  { %v383_v21 = vsel %vm164_vm4, %v751_v18, 0.0 }
 0x34e   :  { %v470_v19 = vsel %vm118_vm6, 1e-09, %v468_v17  ;;  %752 = vpow2.f32 %v381_v16 }
 0x34f   :  { %v472_v20 = vadd.f32 %v470_v19, %v939_v50 }
 0x351   :  { %v724_v33 = vpop.permute.xlu2 %723  ;;  %v476_v38 = vsel %vm164_vm4, %v472_v20, -inf }
 0x352   :  { %v725_v22 = vunpack.i.l.bf16 %v724_v33  ;;  %384 = vadd.xlane.f32.xlu0 %v383_v21  ;;  %477 = vmax.xlane.f32.xlu1 %v476_v38  ;;  %v726_v23 = vunpack.i.h.bf16 %v724_v33 }
 0x354   :  { %419 = vmatpush.msrb.mxu3 %v725_v22  ;;  %v753_v24 = vpop.eup %752 }
 0x355   :  { %v386_v25 = vsel %vm164_vm4, %v753_v24, 0.0 }
 0x356   :  { %420 = vmatpush.msrb.mxu3 %v726_v23 }
 0x358   :  { %587 = vmatpush.msra.mxu3 %v564_v51 }
 0x35a   :  { %387 = vadd.xlane.f32.xlu0 %v386_v25  ;;  %588 = vmatpush.msra.mxu3 %v563_v52 }
 0x35c   :  { %589 = vmatpush.msra.mxu3 %v562_v53 }
 0x35e   :  { %590 = vmatpush.msra.mxu3 %v561_v57 }
 0x3bd   :  { %v475_v43 = vpop.xlane.xlu0 %474 }
 0x3be   :  { %v479_v26 = vsub.f32 %v471_v9, %v475_v43 }
 0x3c0   :  { %v481_v27 = vmul.f32 1.442695, %v479_v26 }
 0x3c2   :  { %754 = vpow2.f32 %v481_v27 }
 0x3c5   :  { %v385_v50 = vpop.xlane.xlu0 %384  ;;  %v478_v28 = vpop.xlane.xlu1 %477 }
 0x3c6   :  { %756 = vrcp.f32 %v385_v50  ;;  %v480_v29 = vsub.f32 %v472_v20, %v478_v28 }
 0x3c8   :  { %v755_v30 = vpop.eup %754  ;;  %v483_v31 = vmul.f32 1.442695, %v480_v29 }
 0x3c9   :  { %v485_v32 = vsel %vm164_vm4, %v755_v30, 0.0 }
 0x3ca   :  { %758 = vpow2.f32 %v483_v31  ;;  %486 = vadd.xlane.f32.xlu1 %v485_v32 }
 0x3cc   :  { %v757_v34 = vpop.eup %756 }
 0x3cd   :  { %v388_v35 = vpop.xlane.xlu0 %387  ;;  %v391_v36 = vmul.f32 %v757_v34, %v751_v18 }
 0x3ce   :  { %760 = vrcp.f32 %v388_v35 }
 0x3cf   :  { %685 = vmatmul.msk.f32.vlgmr.msrb.gmra.mxu3 %vm164_vm4, %v391_v36 }
 0x3d0   :  { %v759_v37 = vpop.eup %758 }
 0x3d1   :  { %v488_v39 = vsel %vm164_vm4, %v759_v37, 0.0 }
 0x3d2   :  { %489 = vadd.xlane.f32.xlu0 %v488_v39 }
 0x3d4   :  { %v761_v40 = vpop.eup %760 }
 0x3d5   :  { %v392_v41 = vmul.f32 %v761_v40, %v753_v24 }
 0x3d7   :  { %686 = vmatmul.msk.f32.gmra.mxu3 %vm164_vm4, %v392_v41 }
 0x3e3   :  { %728 = vrot.lane.b32.xlu1 %v953_v1, %s804_s30 }
 0x3e6   :  { %532 = vrot.lane.b32.xlu0 %v320_v0, %s795_s22 }
 0x3eb   :  { %534 = vrot.lane.b32.xlu1 %v323_v2, %s795_s22 }
 0x43d   :  { %v487_v42 = vpop.xlane.xlu1 %486 }
 0x43e   :  { %762 = vrcp.f32 %v487_v42 }
 0x444   :  { %v763_v45 = vpop.eup %762 }
 0x445   :  { %v490_v12 = vpop.xlane.xlu0 %489  ;;  %v493_v48 = vmul.f32 %v763_v45, %v755_v30 }
 0x446   :  { %764 = vrcp.f32 %v490_v12 }
 0x44c   :  { %v765_v1 = vpop.eup %764 }
 0x44d   :  { %v494_v49 = vmul.f32 %v765_v1, %v759_v37 }
 0x452   :  { %v422_v10 = vpop.f32.mrf.mxu3 }
 0x453   :  { %540 = vrot.lane.b32.xlu2 %v422_v10, %s805_s7 }
 0x455   :  { %v729_v44 = vpop.permute.xlu1 %728 }
 0x456   :  { %v730_v46 = vunpack.i.l.bf16 %v729_v44  ;;  %v731_v47 = vunpack.i.h.bf16 %v729_v44 }
 0x458   :  { %521 = vmatpush.msra.mxu1 %v730_v46  ;;  %v533_v59 = vpop.permute.xlu0 %532 }
 0x459   :  { %v554_v60 = vsel %vm114_vm1, %v991_v62, %v533_v59  ;;  %v733_v62 = vld [vmem:[%s1051_s5] ss:$0 sm:$0xff]  ;;  %s808_s5 = smov [#allocation2]  }
 0x45a   :  { %522 = vmatpush.msra.mxu1 %v731_v47  ;;  %v425_v55 = vpop.f32.mrf.mxu3 }
 0x45b   :  { %691 = vmatmul.msk.f32.vlgmr.msra.gmra.mxu1 %vm164_vm4, %v493_v48 }
 0x45d   :  { %v535_v3 = vpop.permute.xlu1 %534 }
 0x45e   :  { %v555_v5 = vsel %vm114_vm1, %v993_v63, %v535_v3 }
 0x463   :  { %692 = vmatmul.msk.f32.gmra.mxu1 %vm164_vm4, %v494_v49 }
 0x4ad   :  { %v541_v58 = vpop.permute.xlu2 %540 }
 0x4ae   :  { %v556_v61 = vsel %vm164_vm4, %v554_v60, %v541_v58 }
 0x4d8   :  { %v524_v54 = vpop.f32.mrf.mxu1 }
 0x4d9   :  { %548 = vrot.lane.b32.xlu2 %v524_v54, %s806_s13 }
 0x4e0   :  { %v527_v56 = vpop.f32.mrf.mxu1 }
 0x4e1   :  { %542 = vrot.lane.b32.xlu2 %v425_v55, %s805_s7  ;;  %550 = vrot.lane.b32.xlu0 %v527_v56, %s806_s13 }
 0x533   :  { %v549_v0 = vpop.permute.xlu2 %548 }
 0x534   :  { %v559_v2 = vsel %vm558_vm7, %v556_v61, %v549_v0 }
 0x535   :  { %693 = vmatmul.msk.f32.vlgmr.msra.gmra.mxu3 %vm38_vm0, %v559_v2 }
 0x53b   :  { %v543_v4 = vpop.permute.xlu2 %542 }
 0x53c   :  { %v557_v6 = vsel %vm164_vm4, %v555_v5, %v543_v4 }
 0x553   :  { %v551_v7 = vpop.permute.xlu0 %550 }
 0x554   :  { %v560_v8 = vsel %vm558_vm7, %v557_v6, %v551_v7 }
 0x555   :  { %694 = vmatmul.msk.f32.gmra.mxu3 %vm38_vm0, %v560_v8 }
 0x5b8   :  { %v592_v9 = vpop.f32.mrf.mxu3 }
 0x5b9   :  { %v593_v11 = vadd.f32 %v733_v62, %v592_v9 }
 0x5bb   :  { %v603_v13 = vrot.slane %v593_v11, 2  ;;  %v599_v14 = vrot.slane %v593_v11, 1  ;;  %v607_v15 = vrot.slane %v593_v11, 3 }
 0x5bd   :  { %604 = vrot.lane.b32.xlu2 %v603_v13, %s797_s0  ;;  %600 = vrot.lane.b32.xlu1 %v599_v14, %s807_s17 }
 0x5c5   :  { %608 = vrot.lane.b32.xlu1 %v607_v15, %s794_s15 }
 0x5d8   :  { %v595_v63 = vpop.f32.mrf.mxu3 }
 0x5d9   :  { %v596_v16 = vadd.f32 %v733_v62, %v595_v63 }
 0x5db   :  { %v621_v17 = vrot.slane %v596_v16, 2  ;;  %v617_v18 = vrot.slane %v596_v16, 1  ;;  %v625_v19 = vrot.slane %v596_v16, 3 }
 0x5dd   :  { %622 = vrot.lane.b32.xlu2 %v621_v17, %s797_s0  ;;  %618 = vrot.lane.b32.xlu0 %v617_v18, %s807_s17 }
 0x5e5   :  { %626 = vrot.lane.b32.xlu0 %v625_v19, %s794_s15  ;;  %s652_s15 = sshll.u32 %s808_s5, 4  ;;  %s653_s15 = int_to_ptr.vmem [resolvable:$true] %s652_s15 }
 0x617   :  { %v605_v33 = vpop.permute.xlu2 %604 }
 0x62f   :  { %v601_v20 = vpop.permute.xlu1 %600 }
 0x630   :  { %v611_v21 = vsel %vm38_vm0, %v593_v11, %v601_v20 }
 0x631   :  { %v613_v23 = vsel %vm612_vm8, %v611_v21, %v605_v33 }
 0x637   :  { %v609_v22 = vpop.permute.xlu1 %608  ;;  %v623_v26 = vpop.permute.xlu2 %622 }
 0x638   :  { %v615_v24 = vsel %vm614_vm9, %v613_v23, %v609_v22 }
 0x639   :  { %v633_v43 = vrot.slane %v615_v24, 3 }
 0x63b   :  { %v641_v31 = vsel %vm640_vm10, %v615_v24, %v633_v43 }
 0x64f   :  { %v619_v38 = vpop.permute.xlu0 %618 }
 0x650   :  { %v629_v25 = vsel %vm38_vm0, %v596_v16, %v619_v38 }
 0x651   :  { %v630_v27 = vsel %vm612_vm8, %v629_v25, %v623_v26 }
 0x657   :  { %v627_v50 = vpop.permute.xlu0 %626 }
 0x658   :  { %v631_v28 = vsel %vm614_vm9, %v630_v27, %v627_v50 }
 0x659   :  { %v636_v29 = vrot.slane %v631_v28, 6  ;;  %v638_v30 = vrot.slane %v631_v28, 1 }
 0x65b   :  { %v643_v32 = vsel %vm642_vm11, %v641_v31, %v636_v29 }
 0x65c   :  { %v645_v34 = vsel %vm644_vm12, %v643_v32, %v638_v30 }
 0x65d   :  { %646 = vst [vmem:[#allocation2] sm:$0xf] %v645_v34 }
 0x65e   :  { %657 = dma.vmem_to_hbm [thread:$0]  %s653_s15, 64, %s655_s20, [#allocation3]  }
 0x65f   :  { %790 = dma.done.wait [#allocation3], 64  }
 0x660   :  { %791 = vsyncadd [#allocation3], 4294967232 }
 0x661   :  { %662 = vsyncpa [#allocation3], 1 }

</bundles_post_ra>
